<compile_context>
chip_gen: v6e
topology: v6e:2x2x1
jax: 0.10.0
libtpu: 0.0.40
codegen_flags: <defaults>
</compile_context>

<pallas_src>
import functools

import jax
import jax.numpy as jnp
from jax import lax
from jax.experimental import pallas as pl
from jax.experimental.pallas import tpu as pltpu

ALPHA = 0.2
_CP_GRID = pltpu.CompilerParams(
    dimension_semantics=("parallel",), vmem_limit_bytes=32 * 1024 * 1024)
_CP_NOGRID = pltpu.CompilerParams(vmem_limit_bytes=32 * 1024 * 1024)


def _leaky(x, alpha=ALPHA):
    return jnp.where(x >= 0.0, x, alpha * x)


# -----------------------------------------------------------------------------
# Kernel 1: fused Linear + initial conv (+ LeakyReLU).  Grid over batch.
# -----------------------------------------------------------------------------
def _initial_kernel(attr_ref, colsx_ref, wx_ref, mfold_ref, cfold_ref, o_ref,
                    *, nfeatures):
    b = pl.program_id(0)
    # image-channel part of the first conv: bf16 im2col matmul, f32 accumulation
    acc = jnp.dot(colsx_ref[...], wx_ref[...], preferred_element_type=jnp.float32)
    # folded attr path: Linear(+bias) + zero-pad + attr-channel conv taps
    #   contrib = sum_f attr[b, f] * M_fold[f] + c_fold     (all f32, VPU FMAs)
    acc = acc + cfold_ref[...]
    a = attr_ref[pl.ds(b, 1), :]                      # (1, nfeatures)
    for f in range(nfeatures):                        # small static unroll
        acc = acc + a[:, f:f + 1] * mfold_ref[f]
    o_ref[...] = _leaky(acc).astype(o_ref.dtype)


def initial_fused(attr, cols_x, wx2d, m_fold, c_fold, batch, m1):
    kx = cols_x.shape[1]
    ndf = wx2d.shape[1]
    nfeat = attr.shape[1]
    kern = functools.partial(_initial_kernel, nfeatures=nfeat)
    return pl.pallas_call(
        kern,
        out_shape=jax.ShapeDtypeStruct((batch * m1, ndf), jnp.bfloat16),
        grid=(batch,),
        in_specs=[
            pl.BlockSpec((batch, nfeat), lambda b: (0, 0)),          # attr (full)
            pl.BlockSpec((m1, kx), lambda b: (b, 0)),                # im2col(x) / batch
            pl.BlockSpec((kx, ndf), lambda b: (0, 0)),               # conv weight
            pl.BlockSpec((nfeat, m1, ndf), lambda b: (0, 0, 0)),     # folded attr map
            pl.BlockSpec((m1, ndf), lambda b: (0, 0)),               # folded bias map
        ],
        out_specs=pl.BlockSpec((m1, ndf), lambda b: (b, 0)),
        compiler_params=_CP_GRID,
    )(attr, cols_x, wx2d, m_fold, c_fold)


# -----------------------------------------------------------------------------
# Middle convs: fused matmul + LeakyReLU (bias-free), grid over batch.
# -----------------------------------------------------------------------------
def _conv_kernel(cols_ref, w_ref, o_ref):
    acc = jnp.dot(cols_ref[...], w_ref[...], preferred_element_type=jnp.float32)
    o_ref[...] = _leaky(acc).astype(o_ref.dtype)


def conv_fused(cols, w2d, batch, m_b):
    k = cols.shape[1]
    cout = w2d.shape[1]
    return pl.pallas_call(
        _conv_kernel,
        out_shape=jax.ShapeDtypeStruct((batch * m_b, cout), jnp.bfloat16),
        grid=(batch,),
        in_specs=[pl.BlockSpec((m_b, k), lambda b: (b, 0)),
                  pl.BlockSpec((k, cout), lambda b: (0, 0))],
        out_specs=pl.BlockSpec((m_b, cout), lambda b: (b, 0)),
        compiler_params=_CP_GRID,
    )(cols, w2d)


# -----------------------------------------------------------------------------
# Last kernel: last pyramid conv + LeakyReLU + final 4x4 conv + batch mean.
# -----------------------------------------------------------------------------
def _final_kernel(cols_ref, w_ref, wfin_ref, o_ref, *, inv_batch):
    act = jnp.dot(cols_ref[...], w_ref[...], preferred_element_type=jnp.float32)
    act = _leaky(act)
    # final Conv2d(cndf, 1, 4, 1, 0) on the 4x4xC activation == per-batch dot
    # with the flattened weight; mean over batch == global sum / B.
    s = jnp.sum(act * wfin_ref[...], axis=1, keepdims=True)     # (B*16, 1)
    o_ref[...] = jnp.sum(s, axis=0, keepdims=True) * inv_batch  # (1, 1)


def last_pyramid_final_fused(cols, w2d, w_final_tiled, batch):
    kern = functools.partial(_final_kernel, inv_batch=1.0 / batch)
    return pl.pallas_call(
        kern,
        out_shape=jax.ShapeDtypeStruct((1, 1), jnp.float32),
        in_specs=[pl.BlockSpec(memory_space=pltpu.MemorySpace.VMEM)] * 3,
        out_specs=pl.BlockSpec(memory_space=pltpu.MemorySpace.VMEM),
        compiler_params=_CP_NOGRID,
    )(cols, w2d, w_final_tiled)


# -----------------------------------------------------------------------------
# Host-side layout glue
# -----------------------------------------------------------------------------
def _im2col(x, kh, kw, stride, pad):
    """x: (B, H, W, C) NHWC -> ((B*OH*OW, KH*KW*C), OH, OW); column order (kh,kw,c)."""
    B, H, W, C = x.shape
    if pad:
        x = jnp.pad(x, ((0, 0), (pad, pad), (pad, pad), (0, 0)))
    OH = (H + 2 * pad - kh) // stride + 1
    OW = (W + 2 * pad - kw) // stride + 1
    patches = []
    for i in range(kh):
        for j in range(kw):
            patches.append(
                x[:, i: i + stride * OH: stride, j: j + stride * OW: stride, :])
    cols = jnp.stack(patches, axis=3)            # (B, OH, OW, KH*KW, C)
    return cols.reshape(B * OH * OW, kh * kw * C), OH, OW


def _w2d(w_oihw, dtype=jnp.bfloat16):
    co, ci, kh, kw = w_oihw.shape
    return jnp.transpose(w_oihw, (2, 3, 1, 0)).reshape(kh * kw * ci, co).astype(dtype)


# -----------------------------------------------------------------------------
# Parameters (deterministic synthetic init, PyTorch-native shapes)
# -----------------------------------------------------------------------------
def init_params(key, isize, nc, ndf, nfeatures, n_extra_layers=0):
    assert isize % 16 == 0, "isize has to be a multiple of 16"

    def nxt():
        nonlocal key
        key, sub = jax.random.split(key)
        return sub

    params = {}
    params["lin_w"] = 0.05 * jax.random.normal(nxt(), (isize * isize, nfeatures), jnp.float32)
    params["lin_b"] = 0.05 * jax.random.normal(nxt(), (isize * isize,), jnp.float32)
    params["conv_initial"] = 0.05 * jax.random.normal(nxt(), (ndf, nc + 1, 4, 4), jnp.float32)

    csize, cndf = isize // 2, ndf
    params["conv_extra"] = [
        0.05 * jax.random.normal(nxt(), (cndf, cndf, 3, 3), jnp.float32)
        for _ in range(n_extra_layers)
    ]
    pyramid = []
    while csize > 4:
        pyramid.append(0.05 * jax.random.normal(nxt(), (cndf * 2, cndf, 4, 4), jnp.float32))
        cndf *= 2
        csize //= 2
    params["conv_pyramid"] = pyramid
    params["conv_final"] = 0.05 * jax.random.normal(nxt(), (1, cndf, 4, 4), jnp.float32)
    return params


def prepare_params(params, isize, nc, batch):
    """One-time weight preprocessing: bf16 matmul layouts + attr-path folding."""
    ndf = params["conv_initial"].shape[0]
    nfeat = params["lin_w"].shape[1]
    w_x = params["conv_initial"][:, :nc]           # (ndf, nc, 4, 4)  image channels
    w_a = params["conv_initial"][:, nc:]           # (ndf, 1, 4, 4)   attr channel

    prep = {"wx2d": _w2d(w_x)}

    # Fold Linear(+bias) -> view(isize,isize) -> zero-pad -> attr-channel conv
    # into:  contrib[b, m, co] = sum_f attr[b,f] * M_fold[f,m,co] + c_fold[m,co]
    imgs = jnp.concatenate([params["lin_w"].T, params["lin_b"][None, :]], axis=0)
    imgs = imgs.reshape(nfeat + 1, 1, isize, isize).astype(jnp.float32)
    fold = lax.conv_general_dilated(
        imgs, w_a.astype(jnp.float32), (2, 2), [(1, 1), (1, 1)],
        dimension_numbers=("NCHW", "OIHW", "NCHW"))        # (nfeat+1, ndf, OH, OW)
    oh = isize // 2
    fold = jnp.transpose(fold, (0, 2, 3, 1)).reshape(nfeat + 1, oh * oh, ndf)
    prep["m_fold"] = fold[:nfeat]
    prep["c_fold"] = fold[nfeat]

    prep["extra"] = [_w2d(w) for w in params["conv_extra"]]
    prep["pyramid"] = [_w2d(w) for w in params["conv_pyramid"]]

    cf = params["conv_final"].shape[1]
    wfin = jnp.transpose(params["conv_final"][0], (1, 2, 0)).reshape(16, cf)  # (i,j,c)
    prep["w_final_tiled"] = jnp.tile(wfin, (batch, 1)).astype(jnp.float32)    # (B*16, cf)
    return prep


# -----------------------------------------------------------------------------
# Forward pass (Pallas)
# -----------------------------------------------------------------------------
@jax.jit
def dcgan_d_nobn_forward(prep, x_nchw, attr):
    B = x_nchw.shape[0]
    x = jnp.transpose(x_nchw, (0, 2, 3, 1)).astype(jnp.bfloat16)   # NHWC, bf16

    # fused Linear + initial conv + LeakyReLU
    cols_x, OH, OW = _im2col(x, 4, 4, 2, 1)
    h = initial_fused(attr.astype(jnp.float32), cols_x,
                      prep["wx2d"], prep["m_fold"], prep["c_fold"], B, OH * OW)
    h = h.reshape(B, OH, OW, -1)

    # extra layers: Conv2d(cndf, cndf, 3, 1, 1) + LeakyReLU
    for w2d in prep["extra"]:
        cols, OH, OW = _im2col(h, 3, 3, 1, 1)
        h = conv_fused(cols, w2d, B, OH * OW).reshape(B, OH, OW, -1)

    # pyramid except the last: Conv2d(cndf, 2cndf, 4, 2, 1) + LeakyReLU
    for w2d in prep["pyramid"][:-1]:
        cols, OH, OW = _im2col(h, 4, 4, 2, 1)
        h = conv_fused(cols, w2d, B, OH * OW).reshape(B, OH, OW, -1)

    # last pyramid conv + LeakyReLU + final conv + batch mean, all in one kernel
    cols, OH, OW = _im2col(h, 4, 4, 2, 1)          # OH == OW == 4
    out = last_pyramid_final_fused(cols, prep["pyramid"][-1],
                                   prep["w_final_tiled"], B)
    return out.reshape(1)


# -----------------------------------------------------------------------------
# Pure-JAX reference (correctness check only)
# -----------------------------------------------------------------------------
def reference_forward(params, x_nchw, attr):
    def conv(h, w, stride, pad):
        return lax.conv_general_dilated(
            h, w, (stride, stride), [(pad, pad), (pad, pad)],
            dimension_numbers=("NCHW", "OIHW", "NCHW"))

    def lrelu(v):
        return jnp.where(v >= 0, v, 0.2 * v)

    B, _, isize, _ = x_nchw.shape
    attr_flat = attr @ params["lin_w"].T + params["lin_b"]
    attr_img = attr_flat.reshape(B, 1, isize, isize)
    h = jnp.concatenate([x_nchw, attr_img], axis=1)
    h = lrelu(conv(h, params["conv_initial"], 2, 1))
    for w in params["conv_extra"]:
        h = lrelu(conv(h, w, 1, 1))
    for w in params["conv_pyramid"]:
        h = lrelu(conv(h, w, 2, 1))
    h = conv(h, params["conv_final"], 1, 0)
    return jnp.mean(h, axis=0).reshape(1)


if __name__ == "__main__":
    # TODO(synk): nn.parallel.data_parallel (ngpu > 1) is device sharding, not
    # kernel math; single-device execution only.
    configs = [
        # (B, isize, nc, ndf, nfeatures, n_extra_layers)
        (2, 16, 3, 8, 8, 0),
        (2, 32, 3, 8, 8, 1),   # also exercises extra-layer + multi-level pyramid
    ]
    for (B, isize, nc, ndf, nfeatures, n_extra) in configs:
        key = jax.random.PRNGKey(0)
        kx, kattr, kparams = jax.random.split(key, 3)
        x = jax.random.normal(kx, (B, nc, isize, isize), jnp.float32)   # NCHW input
        attr = jax.random.normal(kattr, (B, nfeatures), jnp.float32)
        params = init_params(kparams, isize, nc, ndf, nfeatures, n_extra)
        prep = prepare_params(params, isize, nc, B)

        out = jax.block_until_ready(dcgan_d_nobn_forward(prep, x, attr))
        ref = jax.block_until_ready(reference_forward(params, x, attr))
        assert out.shape == (1,)
        # bf16 matmul operands (f32 accumulation) => loosened tolerance vs f32 ref
        assert jnp.allclose(out, ref, atol=1e-2, rtol=5e-2), (isize, out, ref)

    print("KERNEL_OK")
</pallas_src>

<mosaic_0001>
module attributes {stable_mosaic.version = 11 : i64} {
  func.func @_initial_kernel(%arg0: i32, %arg1: memref<2x8xf32, #tpu.memory_space<vmem>>, %arg2: memref<64x48xbf16, #tpu.memory_space<vmem>>, %arg3: memref<48x8xbf16, #tpu.memory_space<vmem>>, %arg4: memref<8x64x8xf32, #tpu.memory_space<vmem>>, %arg5: memref<64x8xf32, #tpu.memory_space<vmem>>, %arg6: memref<64x8xbf16, #tpu.memory_space<vmem>>) attributes {dimension_semantics = [#tpu.dimension_semantics<parallel>], iteration_bounds = array<i64: 2>, scalar_prefetch = 0 : i64, scratch_operands = 0 : i64, tpu.core_type = #tpu.core_type<tc>, window_params = [{pipeline_mode = #tpu.pipeline_mode<synchronous>, transform_indices = @transform_0, window_bounds = array<i64: 2, 8>}, {transform_indices = @transform_1, window_bounds = array<i64: 64, 48>}, {pipeline_mode = #tpu.pipeline_mode<synchronous>, transform_indices = @transform_2, window_bounds = array<i64: 48, 8>}, {pipeline_mode = #tpu.pipeline_mode<synchronous>, transform_indices = @transform_3, window_bounds = array<i64: 8, 64, 8>}, {pipeline_mode = #tpu.pipeline_mode<synchronous>, transform_indices = @transform_4, window_bounds = array<i64: 64, 8>}, {transform_indices = @transform_5, window_bounds = array<i64: 64, 8>}]} {
    %c0 = arith.constant 0 : index
    %c0_0 = arith.constant 0 : index
    %0 = vector.load %arg2[%c0, %c0_0] : memref<64x48xbf16, #tpu.memory_space<vmem>>, vector<64x48xbf16>
    %c0_1 = arith.constant 0 : index
    %c0_2 = arith.constant 0 : index
    %1 = vector.load %arg3[%c0_1, %c0_2] : memref<48x8xbf16, #tpu.memory_space<vmem>>, vector<48x8xbf16>
    %cst = arith.constant dense<0.000000e+00> : vector<64x8xf32>
    %2 = tpu.matmul %0, %1, %cst {dimension_numbers = #tpu.dot_dimension_numbers<[1], [0], [0], [1], [0, 0, 1, 1], [], []>} : vector<64x48xbf16>, vector<48x8xbf16>, vector<64x8xf32> -> vector<64x8xf32>
    %c0_3 = arith.constant 0 : index
    %c0_4 = arith.constant 0 : index
    %3 = vector.load %arg5[%c0_3, %c0_4] : memref<64x8xf32, #tpu.memory_space<vmem>>, vector<64x8xf32>
    %4 = arith.addf %2, %3 : vector<64x8xf32>
    %5 = arith.index_cast %arg0 : i32 to index
    %c0_5 = arith.constant 0 : index
    %6 = vector.load %arg1[%5, %c0_5] : memref<2x8xf32, #tpu.memory_space<vmem>>, vector<1x8xf32>
    %7 = vector.extract_strided_slice %6 {offsets = [0, 0], sizes = [1, 1], strides = [1, 1]} : vector<1x8xf32> to vector<1x1xf32>
    %c0_6 = arith.constant 0 : index
    %c0_7 = arith.constant 0 : index
    %c0_8 = arith.constant 0 : index
    %8 = vector.load %arg4[%c0_6, %c0_7, %c0_8] : memref<8x64x8xf32, #tpu.memory_space<vmem>>, vector<1x64x8xf32>
    %9 = vector.shape_cast %8 : vector<1x64x8xf32> to vector<64x8xf32>
    %10 = vector.broadcast %7 : vector<1x1xf32> to vector<64x8xf32>
    %11 = arith.mulf %10, %9 : vector<64x8xf32>
    %12 = arith.addf %4, %11 : vector<64x8xf32>
    %13 = vector.extract_strided_slice %6 {offsets = [0, 1], sizes = [1, 1], strides = [1, 1]} : vector<1x8xf32> to vector<1x1xf32>
    %c1 = arith.constant 1 : index
    %c0_9 = arith.constant 0 : index
    %c0_10 = arith.constant 0 : index
    %14 = vector.load %arg4[%c1, %c0_9, %c0_10] : memref<8x64x8xf32, #tpu.memory_space<vmem>>, vector<1x64x8xf32>
    %15 = vector.shape_cast %14 : vector<1x64x8xf32> to vector<64x8xf32>
    %16 = vector.broadcast %13 : vector<1x1xf32> to vector<64x8xf32>
    %17 = arith.mulf %16, %15 : vector<64x8xf32>
    %18 = arith.addf %12, %17 : vector<64x8xf32>
    %19 = vector.extract_strided_slice %6 {offsets = [0, 2], sizes = [1, 1], strides = [1, 1]} : vector<1x8xf32> to vector<1x1xf32>
    %c2 = arith.constant 2 : index
    %c0_11 = arith.constant 0 : index
    %c0_12 = arith.constant 0 : index
    %20 = vector.load %arg4[%c2, %c0_11, %c0_12] : memref<8x64x8xf32, #tpu.memory_space<vmem>>, vector<1x64x8xf32>
    %21 = vector.shape_cast %20 : vector<1x64x8xf32> to vector<64x8xf32>
    %22 = vector.broadcast %19 : vector<1x1xf32> to vector<64x8xf32>
    %23 = arith.mulf %22, %21 : vector<64x8xf32>
    %24 = arith.addf %18, %23 : vector<64x8xf32>
    %25 = vector.extract_strided_slice %6 {offsets = [0, 3], sizes = [1, 1], strides = [1, 1]} : vector<1x8xf32> to vector<1x1xf32>
    %c3 = arith.constant 3 : index
    %c0_13 = arith.constant 0 : index
    %c0_14 = arith.constant 0 : index
    %26 = vector.load %arg4[%c3, %c0_13, %c0_14] : memref<8x64x8xf32, #tpu.memory_space<vmem>>, vector<1x64x8xf32>
    %27 = vector.shape_cast %26 : vector<1x64x8xf32> to vector<64x8xf32>
    %28 = vector.broadcast %25 : vector<1x1xf32> to vector<64x8xf32>
    %29 = arith.mulf %28, %27 : vector<64x8xf32>
    %30 = arith.addf %24, %29 : vector<64x8xf32>
    %31 = vector.extract_strided_slice %6 {offsets = [0, 4], sizes = [1, 1], strides = [1, 1]} : vector<1x8xf32> to vector<1x1xf32>
    %c4 = arith.constant 4 : index
    %c0_15 = arith.constant 0 : index
    %c0_16 = arith.constant 0 : index
    %32 = vector.load %arg4[%c4, %c0_15, %c0_16] : memref<8x64x8xf32, #tpu.memory_space<vmem>>, vector<1x64x8xf32>
    %33 = vector.shape_cast %32 : vector<1x64x8xf32> to vector<64x8xf32>
    %34 = vector.broadcast %31 : vector<1x1xf32> to vector<64x8xf32>
    %35 = arith.mulf %34, %33 : vector<64x8xf32>
    %36 = arith.addf %30, %35 : vector<64x8xf32>
    %37 = vector.extract_strided_slice %6 {offsets = [0, 5], sizes = [1, 1], strides = [1, 1]} : vector<1x8xf32> to vector<1x1xf32>
    %c5 = arith.constant 5 : index
    %c0_17 = arith.constant 0 : index
    %c0_18 = arith.constant 0 : index
    %38 = vector.load %arg4[%c5, %c0_17, %c0_18] : memref<8x64x8xf32, #tpu.memory_space<vmem>>, vector<1x64x8xf32>
    %39 = vector.shape_cast %38 : vector<1x64x8xf32> to vector<64x8xf32>
    %40 = vector.broadcast %37 : vector<1x1xf32> to vector<64x8xf32>
    %41 = arith.mulf %40, %39 : vector<64x8xf32>
    %42 = arith.addf %36, %41 : vector<64x8xf32>
    %43 = vector.extract_strided_slice %6 {offsets = [0, 6], sizes = [1, 1], strides = [1, 1]} : vector<1x8xf32> to vector<1x1xf32>
    %c6 = arith.constant 6 : index
    %c0_19 = arith.constant 0 : index
    %c0_20 = arith.constant 0 : index
    %44 = vector.load %arg4[%c6, %c0_19, %c0_20] : memref<8x64x8xf32, #tpu.memory_space<vmem>>, vector<1x64x8xf32>
    %45 = vector.shape_cast %44 : vector<1x64x8xf32> to vector<64x8xf32>
    %46 = vector.broadcast %43 : vector<1x1xf32> to vector<64x8xf32>
    %47 = arith.mulf %46, %45 : vector<64x8xf32>
    %48 = arith.addf %42, %47 : vector<64x8xf32>
    %49 = vector.extract_strided_slice %6 {offsets = [0, 7], sizes = [1, 1], strides = [1, 1]} : vector<1x8xf32> to vector<1x1xf32>
    %c7 = arith.constant 7 : index
    %c0_21 = arith.constant 0 : index
    %c0_22 = arith.constant 0 : index
    %50 = vector.load %arg4[%c7, %c0_21, %c0_22] : memref<8x64x8xf32, #tpu.memory_space<vmem>>, vector<1x64x8xf32>
    %51 = vector.shape_cast %50 : vector<1x64x8xf32> to vector<64x8xf32>
    %52 = vector.broadcast %49 : vector<1x1xf32> to vector<64x8xf32>
    %53 = arith.mulf %52, %51 : vector<64x8xf32>
    %54 = arith.addf %48, %53 : vector<64x8xf32>
    %cst_23 = arith.constant 0.000000e+00 : f32
    %55 = vector.broadcast %cst_23 : f32 to vector<64x8xf32>
    %56 = arith.cmpf oge, %54, %55 : vector<64x8xf32>
    %cst_24 = arith.constant 2.000000e-01 : f32
    %57 = vector.broadcast %cst_24 : f32 to vector<64x8xf32>
    %58 = arith.mulf %57, %54 : vector<64x8xf32>
    %59 = arith.select %56, %54, %58 : vector<64x8xi1>, vector<64x8xf32>
    %60 = arith.truncf %59 : vector<64x8xf32> to vector<64x8xbf16>
    %c0_25 = arith.constant 0 : index
    %c0_26 = arith.constant 0 : index
    %61 = vector.load %arg6[%c0_25, %c0_26] : memref<64x8xbf16, #tpu.memory_space<vmem>>, vector<64x8xbf16>
    tpu.vector_store %arg6[%c0_25, %c0_26], %60 {strides = array<i32>} : memref<64x8xbf16, #tpu.memory_space<vmem>>, vector<64x8xbf16>,
    return
  }
  func.func @transform_0(%arg0: i32) -> (i32, i32) {
    %c0_i32 = arith.constant 0 : i32
    %c0_i32_0 = arith.constant 0 : i32
    %c0_i32_1 = arith.constant 0 : i32
    return %c0_i32, %c0_i32_0 : i32, i32
  }
  func.func @transform_1(%arg0: i32) -> (i32, i32) {
    %c0_i32 = arith.constant 0 : i32
    %c0_i32_0 = arith.constant 0 : i32
    return %arg0, %c0_i32 : i32, i32
  }
  func.func @transform_2(%arg0: i32) -> (i32, i32) {
    %c0_i32 = arith.constant 0 : i32
    %c0_i32_0 = arith.constant 0 : i32
    %c0_i32_1 = arith.constant 0 : i32
    return %c0_i32, %c0_i32_0 : i32, i32
  }
  func.func @transform_3(%arg0: i32) -> (i32, i32, i32) {
    %c0_i32 = arith.constant 0 : i32
    %c0_i32_0 = arith.constant 0 : i32
    %c0_i32_1 = arith.constant 0 : i32
    %c0_i32_2 = arith.constant 0 : i32
    return %c0_i32, %c0_i32_0, %c0_i32_1 : i32, i32, i32
  }
  func.func @transform_4(%arg0: i32) -> (i32, i32) {
    %c0_i32 = arith.constant 0 : i32
    %c0_i32_0 = arith.constant 0 : i32
    %c0_i32_1 = arith.constant 0 : i32
    return %c0_i32, %c0_i32_0 : i32, i32
  }
  func.func @transform_5(%arg0: i32) -> (i32, i32) {
    %c0_i32 = arith.constant 0 : i32
    %c0_i32_0 = arith.constant 0 : i32
    return %arg0, %c0_i32 : i32, i32
  }
}

module attributes {stable_mosaic.version = 11 : i64} {
  func.func @_final_kernel(%arg0: memref<32x128xbf16, #tpu.memory_space<vmem>>, %arg1: memref<128x16xbf16, #tpu.memory_space<vmem>>, %arg2: memref<32x16xf32, #tpu.memory_space<vmem>>, %arg3: memref<1x1xf32, #tpu.memory_space<vmem>>) attributes {dimension_semantics = [], scalar_prefetch = 0 : i64, scratch_operands = 0 : i64, tpu.core_type = #tpu.core_type<tc>} {
    %c0 = arith.constant 0 : index
    %c0_0 = arith.constant 0 : index
    %0 = vector.load %arg0[%c0, %c0_0] : memref<32x128xbf16, #tpu.memory_space<vmem>>, vector<32x128xbf16>
    %c0_1 = arith.constant 0 : index
    %c0_2 = arith.constant 0 : index
    %1 = vector.load %arg1[%c0_1, %c0_2] : memref<128x16xbf16, #tpu.memory_space<vmem>>, vector<128x16xbf16>
    %cst = arith.constant dense<0.000000e+00> : vector<32x16xf32>
    %2 = tpu.matmul %0, %1, %cst {dimension_numbers = #tpu.dot_dimension_numbers<[1], [0], [0], [1], [0, 0, 1, 1], [], []>} : vector<32x128xbf16>, vector<128x16xbf16>, vector<32x16xf32> -> vector<32x16xf32>
    %cst_3 = arith.constant 0.000000e+00 : f32
    %3 = vector.broadcast %cst_3 : f32 to vector<32x16xf32>
    %4 = arith.cmpf oge, %2, %3 : vector<32x16xf32>
    %cst_4 = arith.constant 2.000000e-01 : f32
    %5 = vector.broadcast %cst_4 : f32 to vector<32x16xf32>
    %6 = arith.mulf %5, %2 : vector<32x16xf32>
    %7 = arith.select %4, %2, %6 : vector<32x16xi1>, vector<32x16xf32>
    %c0_5 = arith.constant 0 : index
    %c0_6 = arith.constant 0 : index
    %8 = vector.load %arg2[%c0_5, %c0_6] : memref<32x16xf32, #tpu.memory_space<vmem>>, vector<32x16xf32>
    %9 = arith.mulf %7, %8 : vector<32x16xf32>
    %cst_7 = arith.constant dense<0.000000e+00> : vector<32xf32>
    %10 = vector.multi_reduction <add>, %9, %cst_7 [1] : vector<32x16xf32> to vector<32xf32>
    %11 = vector.shape_cast %10 : vector<32xf32> to vector<32x1xf32>
    %cst_8 = arith.constant dense<0.000000e+00> : vector<1xf32>
    %12 = vector.multi_reduction <add>, %11, %cst_8 [0] : vector<32x1xf32> to vector<1xf32>
    %13 = vector.shape_cast %12 : vector<1xf32> to vector<1x1xf32>
    %cst_9 = arith.constant 5.000000e-01 : f32
    %14 = vector.broadcast %cst_9 : f32 to vector<1x1xf32>
    %15 = arith.mulf %13, %14 : vector<1x1xf32>
    %c0_10 = arith.constant 0 : index
    %c0_11 = arith.constant 0 : index
    %16 = vector.load %arg3[%c0_10, %c0_11] : memref<1x1xf32, #tpu.memory_space<vmem>>, vector<1x1xf32>
    tpu.vector_store %arg3[%c0_10, %c0_11], %15 {strides = array<i32>} : memref<1x1xf32, #tpu.memory_space<vmem>>, vector<1x1xf32>,
    return
  }
}

</mosaic_0001>

<bundles_post_ra>
// kernel: dcgan_d_nobn_forward.2
= control target key start
LH: loop header
LB: loop body
LE: loop exit
PB: predicated region body
PF: predicated region fallthrough
CT: control target
= control target key end

     0   :  { %s933_s18 = smov 0   ;;  %s1386_s0 = inlined_call_operand.vmem [shape: f32[2,8], index: 0, kind: input, shape index: {}]   ;;  %s1387_s1 = inlined_call_operand.vmem [shape: bf16[128,48], index: 1, kind: input, shape index: {}]   ;;  %s1388_s2 = inlined_call_operand.vmem [shape: bf16[48,8], index: 2, kind: input, shape index: {}]   ;;  %s1389_s3 = inlined_call_operand.vmem [shape: f32[8,64,8], index: 3, kind: input, shape index: {}]   ;;  %s1390_s4 = inlined_call_operand.vmem [shape: f32[64,8], index: 4, kind: input, shape index: {}]   ;;  %s1391_s5 = inlined_call_operand.vmem [shape: bf16[128,8], index: 5, kind: output, shape index: {}]  }
   0x1 LB: > { %s729_s19 = sadd.s32 4294967295, %s894_s18   ;;  %p733_p0 = scmp.ge.s32.totalorder %s894_s18, 1  ;;  %s894_s18 = sphi %s933_s18, %s15_s18  }
   0x2   : > { %p188_p1 = scmp.lt.s32.totalorder %s894_s18, 3 }
   0x4   : > { %p189_p2 = pnand %p733_p0, %p188_p1 }
   0x6   : > { %192 = sbr.rel (%p189_p2) target bundleno = 250 (0xfa), region = 40 }
   0xb   : > { %v881_v0 = vld [vmem:[%s1388_s2 + $0x10] sm:$0xff]   ;;  %s734_s22 = sshll.u32 %s729_s19, 3  ;;  %s367_s25 = scalar_lea.vmem %s1386_s0, %s729_s19  ;;  %v882_v1 = vld [vmem:[%s1388_s2 + $0x8] sm:$0xff]   ;;  %v883_v3 = vld [vmem:[%s1388_s2] sm:$0xff]   ;;  %vm289_vm0 = vcmask 392192   ;;  %vm663_vm1 = vcmask 60416  }
   0xc   : > { %p217_p3 = scmp.lt.s32.totalorder %s734_s22, 15  ;;  %830 = vmatprep.subr.bf16.mxu0 %v881_v0  ;;  %844 = vmatprep.subr.bf16.mxu1 %v881_v0  ;;  %v368_v2 = vld [vmem:[%s367_s25] sm:$0x1]  ;;  %s896_s6 = smov 127   ;;  %v371_v15 = vld [vmem:[%s1389_s3 + $0x10] sm:$0xff]  ;;  %v372_v23 = vld [vmem:[%s1389_s3 + $0x18] sm:$0xff] }
   0xd   : > { %831 = vmatpush3.bf16.msra.mxu0 %v881_v0  ;;  %847 = vmatpush3.bf16.msra.mxu1 %v881_v0  ;;  %850 = vpush %v368_v2  ;;  %s897_s7 = smov 125   ;;  %s898_s11 = smov 126   ;;  %v375_v16 = vld [vmem:[%s1389_s3 + $0x30] sm:$0xff]  ;;  %v369_v19 = vld [vmem:[%s1389_s3] sm:$0xff]  ;;  %v376_v24 = vld [vmem:[%s1389_s3 + $0x38] sm:$0xff] }
   0xe   : > { %s1429_s22 = smov (!%p217_p3, %s734_s22), 15  ;;  %832 = vmatprep.subr.bf16.mxu0 %v882_v1  ;;  %845 = vmatprep.subr.bf16.mxu1 %v882_v1  ;;  %s899_s12 = smov 124   ;;  %v751_v18 = vld [vmem:[%s1389_s3 + $0x50] sm:$0xff]  ;;  %v373_v20 = vld [vmem:[%s1389_s3 + $0x20] sm:$0xff]  ;;  %v370_v27 = vld [vmem:[%s1389_s3 + $0x8] sm:$0xff] }
   0xf   : > { %s735_s30 = sshll.u32 %s1429_s22, 2  ;;  %406 = vrot.lane.b32.xlu0 %v368_v2, %s896_s6  ;;  %466 = vrot.lane.b32.xlu1 %v368_v2, %s897_s7  ;;  %s900_s13 = smov 123   ;;  %v755_v21 = vld [vmem:[%s1389_s3 + $0x70] sm:$0xff]  ;;  %v749_v22 = vld [vmem:[%s1389_s3 + $0x40] sm:$0xff] }
  0x10   : > { %s220_s10 = scalar_lea.vmem %s1387_s1, %s735_s30  ;;  %s901_s14 = smov 122   ;;  %v753_v26 = vld [vmem:[%s1389_s3 + $0x60] sm:$0xff]  ;;  %v374_v28 = vld [vmem:[%s1389_s3 + $0x28] sm:$0xff]  ;;  %v759_v32 = vld [vmem:[%s1389_s3 + $0x90] sm:$0xff] }
  0x11   : > { %833 = vmatpush3.bf16.msra.mxu0 %v882_v1  ;;  %848 = vmatpush3.bf16.msra.mxu1 %v882_v1  ;;  %v884_v4 = vld [vmem:[%s220_s10] sm:$0xff]   ;;  %v885_v5 = vld [vmem:[%s220_s10 + $0x10] sm:$0xff]   ;;  %v886_v6 = vld [vmem:[%s220_s10 + $0x8] sm:$0xff]   ;;  %s902_s15 = smov 121   ;;  %s226_s20 = scalar_lea.vmem %s1391_s5, %s735_s30 }
  0x12   : > { %834 = vmatprep.subr.bf16.mxu0 %v883_v3  ;;  %846 = vmatprep.subr.bf16.mxu1 %v883_v3  ;;  %v887_v7 = vld [vmem:[%s220_s10 + $0x18] sm:$0xff]   ;;  %v757_v31 = vld [vmem:[%s1389_s3 + $0x80] sm:$0xff]  ;;  %v763_v34 = vld [vmem:[%s1389_s3 + $0xb0] sm:$0xff] }
  0x13   : > { %836 = vmatprep.mubr.msk.bf16.mxu0 %vm289_vm0, %v884_v4  ;;  %436 = vrot.lane.b32.xlu0 %v368_v2, %s898_s11  ;;  %v761_v33 = vld [vmem:[%s1389_s3 + $0xa0] sm:$0xff]  ;;  %v752_v35 = vld [vmem:[%s1389_s3 + $0x58] sm:$0xff]  ;;  %v750_v41 = vld [vmem:[%s1389_s3 + $0x48] sm:$0xff] }
  0x14   : > { %840 = vmatprep.mubr.msk.bf16.mxu1 %vm289_vm0, %v885_v5  ;;  %496 = vrot.lane.b32.xlu1 %v368_v2, %s899_s12  ;;  %v756_v40 = vld [vmem:[%s1389_s3 + $0x78] sm:$0xff]  ;;  %v754_v42 = vld [vmem:[%s1389_s3 + $0x68] sm:$0xff]  ;;  %v765_v47 = vld [vmem:[%s1389_s3 + $0xc0] sm:$0xff] }
  0x15   : > { %835 = vmatpush3.bf16.msra.mxu0 %v883_v3  ;;  %849 = vmatpush3.bf16.msra.mxu1 %v883_v3  ;;  %v760_v45 = vld [vmem:[%s1389_s3 + $0x98] sm:$0xff]  ;;  %v767_v48 = vld [vmem:[%s1389_s3 + $0xd0] sm:$0xff]  ;;  %v769_v56 = vld [vmem:[%s1389_s3 + $0xe0] sm:$0xff] }
  0x16   : > { %v764_v46 = vld [vmem:[%s1389_s3 + $0xb8] sm:$0xff]  ;;  %v771_v57 = vld [vmem:[%s1389_s3 + $0xf0] sm:$0xff]  ;;  %v758_v58 = vld [vmem:[%s1389_s3 + $0x88] sm:$0xff] }
  0x17   : > { %526 = vrot.lane.b32.xlu0 %v368_v2, %s900_s13  ;;  %v768_v55 = vld [vmem:[%s1389_s3 + $0xd8] sm:$0xff]  ;;  %v766_v63 = vld [vmem:[%s1389_s3 + $0xc8] sm:$0xff] }
  0x18   : > { %837 = vmatmul.mubr.msk.bf16.vlgmr.msra.gmra.mxu0 %vm289_vm0, %v886_v6  ;;  %841 = vmatmul.mubr.msk.bf16.vlgmr.msra.gmra.mxu1 %vm289_vm0, %v887_v7  ;;  %v772_v60 = vld [vmem:[%s1389_s3 + $0xf8] sm:$0xff]  ;;  %v762_v1 = vld [vmem:[%s1389_s3 + $0xa8] sm:$0xff]  ;;  %v773_v7 = vld [vmem:[%s1389_s3 + $0x100] sm:$0xff] }
  0x19   : > { %556 = vrot.lane.b32.xlu1 %v368_v2, %s901_s14  ;;  %v770_v6 = vld [vmem:[%s1389_s3 + $0xe8] sm:$0xff] }
  0x1b   : > { %586 = vrot.lane.b32.xlu0 %v368_v2, %s902_s15 }
  0x3e   : > { %s851_s16 = spop %850 }
  0x3f   : > { %v379_v17 = vstv %s851_s16 }
  0x40   : > { %v1001_v29 = vmul.f32 %v379_v17, %v371_v15  ;;  %v1003_v30 = vmul.f32 %v379_v17, %v375_v16  ;;  %v1020_v36 = vmul.f32 %v379_v17, %v369_v19  ;;  %v1022_v37 = vmul.f32 %v379_v17, %v373_v20  ;;  %v777_v15 = vld [vmem:[%s1389_s3 + $0x120] sm:$0xff]  ;;  %v778_v19 = vld [vmem:[%s1389_s3 + $0x128] sm:$0xff]  ;;  %v779_v20 = vld [vmem:[%s1389_s3 + $0x130] sm:$0xff] }
  0x41   : > { %v1024_v38 = vmul.f32 %v379_v17, %v372_v23  ;;  %v1026_v39 = vmul.f32 %v379_v17, %v376_v24  ;;  %v1051_v49 = vmul.f32 %v379_v17, %v370_v27  ;;  %v1053_v50 = vmul.f32 %v379_v17, %v374_v28  ;;  %v781_v27 = vld [vmem:[%s1389_s3 + $0x140] sm:$0xff]  ;;  %v782_v28 = vld [vmem:[%s1389_s3 + $0x148] sm:$0xff] }
  0x81   : > { %v407_v8 = vpop.permute.xlu0 %406  ;;  %v467_v9 = vpop.permute.xlu1 %466 }
  0x82   : > { %852 = vpush %v407_v8  ;;  %v775_v8 = vld [vmem:[%s1389_s3 + $0x110] sm:$0xff] }
  0x85   : > { %v437_v10 = vpop.permute.xlu0 %436 }
  0x86   : > { %854 = vpush %v437_v10  ;;  %v497_v11 = vpop.permute.xlu1 %496 }
  0x87   : > { %856 = vpush %v467_v9 }
  0x88   : > { %858 = vpush %v497_v11 }
  0x89   : > { %v527_v12 = vpop.permute.xlu0 %526 }
  0x8a   : > { %860 = vpush %v527_v12 }
  0x8b   : > { %v557_v13 = vpop.permute.xlu1 %556 }
  0x8c   : > { %862 = vpush %v557_v13  ;;  %v774_v13 = vld [vmem:[%s1389_s3 + $0x108] sm:$0xff] }
  0x8d   : > { %v587_v14 = vpop.permute.xlu0 %586 }
  0x8e   : > { %864 = vpush %v587_v14  ;;  %v776_v14 = vld [vmem:[%s1389_s3 + $0x118] sm:$0xff] }
  0xb3   : > { %s853_s23 = spop %852 }
  0xb4   : > { %v409_v25 = vstv %s853_s23 }
  0xb5   : > { %v1037_v43 = vmul.f32 %v751_v18, %v409_v25  ;;  %v1055_v51 = vmul.f32 %v755_v21, %v409_v25  ;;  %v1057_v52 = vmul.f32 %v749_v22, %v409_v25  ;;  %v1059_v53 = vmul.f32 %v753_v26, %v409_v25  ;;  %v780_v21 = vld [vmem:[%s1389_s3 + $0x138] sm:$0xff] }
  0xb6   : > { %v1061_v54 = vmul.f32 %v752_v35, %v409_v25  ;;  %v1075_v59 = vmul.f32 %v756_v40, %v409_v25  ;;  %v1080_v62 = vmul.f32 %v750_v41, %v409_v25  ;;  %v1085_v0 = vmul.f32 %v754_v42, %v409_v25  ;;  %v784_v35 = vld [vmem:[%s1389_s3 + $0x158] sm:$0xff]  ;;  %v785_v40 = vld [vmem:[%s1389_s3 + $0x160] sm:$0xff]  ;;  %v786_v41 = vld [vmem:[%s1389_s3 + $0x168] sm:$0xff] }
  0xb7   : > { %s855_s16 = spop %854 }
  0xb8   : > { %s857_s11 = spop %856  ;;  %v439_v44 = vstv %s855_s16 }
  0xb9   : > { %v469_v61 = vstv %s857_s11  ;;  %s859_s19 = spop %858  ;;  %v1090_v2 = vmul.f32 %v757_v31, %v439_v44  ;;  %v1092_v3 = vmul.f32 %v759_v32, %v439_v44  ;;  %v1094_v4 = vmul.f32 %v761_v33, %v439_v44  ;;  %v783_v31 = vld [vmem:[%s1389_s3 + $0x150] sm:$0xff] }
  0xba   : > { %v1096_v5 = vmul.f32 %v763_v34, %v439_v44  ;;  %v1107_v9 = vmul.f32 %v760_v45, %v439_v44  ;;  %v1109_v10 = vmul.f32 %v764_v46, %v439_v44  ;;  %v1111_v11 = vmul.f32 %v765_v47, %v469_v61  ;;  %v249_v45 = vld [vmem:[%s1390_s4 + $0x30] sm:$0xff] }
  0xbb   : > { %v1113_v12 = vmul.f32 %v758_v58, %v439_v44  ;;  %s861_s7 = spop %860  ;;  %v1124_v16 = vmul.f32 %v767_v48, %v469_v61  ;;  %v1126_v17 = vmul.f32 %v768_v55, %v469_v61  ;;  %v1128_v18 = vmul.f32 %v769_v56, %v469_v61  ;;  %v787_v56 = vld [vmem:[%s1389_s3 + $0x170] sm:$0xff]  ;;  %v789_v58 = vld [vmem:[%s1389_s3 + $0x180] sm:$0xff] }
  0xbc   : > { %v499_v22 = vstv %s859_s19  ;;  %v1139_v23 = vmul.f32 %v771_v57, %v469_v61  ;;  %v1141_v24 = vmul.f32 %v772_v60, %v469_v61  ;;  %v1143_v25 = vmul.f32 %v766_v63, %v469_v61  ;;  %v788_v57 = vld [vmem:[%s1389_s3 + $0x178] sm:$0xff] }
  0xbd   : > { %v1145_v26 = vmul.f32 %v762_v1, %v439_v44  ;;  %s863_s19 = spop %862  ;;  %v1156_v32 = vmul.f32 %v770_v6, %v469_v61  ;;  %v1158_v33 = vmul.f32 %v773_v7, %v499_v22  ;;  %v1160_v34 = vmul.f32 %v774_v13, %v499_v22  ;;  %v245_v44 = vld [vmem:[%s1390_s4 + $0x10] sm:$0xff]  ;;  %v790_v1 = vld [vmem:[%s1389_s3 + $0x188] sm:$0xff]  ;;  %v792_v7 = vld [vmem:[%s1389_s3 + $0x198] sm:$0xff] }
  0xbe   : > { %1392 = vst [vmem:[#allocation2_spill] sm:$0xff] %v1143_v25  ;;  %v529_v42 = vstv %s861_s7  ;;  %v1177_v46 = vmul.f32 %v775_v8, %v499_v22  ;;  %v1179_v47 = vmul.f32 %v776_v14, %v499_v22  ;;  %v1181_v48 = vmul.f32 %v777_v15, %v499_v22  ;;  %v791_v6 = vld [vmem:[%s1389_s3 + $0x190] sm:$0xff] }
  0xbf   : > { %1393 = vst [vmem:[#allocation3_spill] sm:$0xff] %v1156_v32  ;;  %1394 = vst [vmem:[#allocation4_spill] sm:$0xff] %v1160_v34  ;;  %v1183_v55 = vmul.f32 %v778_v19, %v499_v22  ;;  %s865_s17 = spop %864  ;;  %v1194_v60 = vmul.f32 %v779_v20, %v499_v22  ;;  %v1196_v61 = vmul.f32 %v780_v21, %v499_v22  ;;  %v559_v8 = vstv %s863_s19  ;;  %v793_v20 = vld [vmem:[%s1389_s3 + $0x1a0] sm:$0xff]  ;;  %v794_v21 = vld [vmem:[%s1389_s3 + $0x1a8] sm:$0xff] }
  0xc0   : > { %1395 = vst [vmem:[#allocation5_spill] sm:$0xff] %v1179_v47  ;;  %v1198_v63 = vmul.f32 %v781_v27, %v529_v42  ;;  %v1209_v13 = vmul.f32 %v782_v28, %v529_v42  ;;  %v1211_v14 = vmul.f32 %v783_v31, %v529_v42  ;;  %v1213_v15 = vmul.f32 %v784_v35, %v529_v42  ;;  %v795_v22 = vld [vmem:[%s1389_s3 + $0x1b0] sm:$0xff]  ;;  %v796_v35 = vld [vmem:[%s1389_s3 + $0x1b8] sm:$0xff] }
  0xc1   : > { %1396 = vst [vmem:[#allocation6_spill] sm:$0xff] %v1183_v55  ;;  %1397 = vst [vmem:[#allocation7_spill] sm:$0xff] %v1196_v61  ;;  %v1215_v19 = vmul.f32 %v785_v40, %v529_v42  ;;  %v1226_v27 = vmul.f32 %v786_v41, %v529_v42  ;;  %v1228_v28 = vmul.f32 %v787_v56, %v529_v42  ;;  %v797_v40 = vld [vmem:[%s1389_s3 + $0x1c0] sm:$0xff]  ;;  %v799_v61 = vld [vmem:[%s1389_s3 + $0x1d0] sm:$0xff] }
  0xc2   : > { %1398 = vst [vmem:[#allocation8_spill] sm:$0xff] %v1209_v13  ;;  %1399 = vst [vmem:[#allocation9_spill] sm:$0xff] %v1213_v15  ;;  %v1230_v31 = vmul.f32 %v788_v57, %v529_v42  ;;  %v798_v13 = vld [vmem:[%s1389_s3 + $0x1c8] sm:$0xff]  ;;  %v589_v15 = vstv %s865_s17  ;;  %v243_v42 = vld [vmem:[%s1390_s4] sm:$0xff]  ;;  %v1247_v57 = vmul.f32 %v789_v58, %v559_v8  ;;  %v1253_v34 = vmul.f32 %v792_v7, %v559_v8 }
  0xc3   : > { %1400 = vst [vmem:[#allocation10_spill] sm:$0xff] %v1215_v19  ;;  %1401 = vst [vmem:[#allocation11_spill] sm:$0xff] %v1226_v27  ;;  %v247_v56 = vld [vmem:[%s1390_s4 + $0x20] sm:$0xff]  ;;  %v1249_v27 = vmul.f32 %v790_v1, %v559_v8  ;;  %v1258_v25 = vmul.f32 %v793_v20, %v559_v8  ;;  %v1260_v19 = vmul.f32 %v794_v21, %v559_v8  ;;  %v800_v58 = vld [vmem:[%s1389_s3 + $0x1d8] sm:$0xff] }
  0xc4   : > { %1402 = vst [vmem:[#allocation12_spill] sm:$0xff] %v1230_v31  ;;  %1403 = vst [vmem:[#allocation13_spill] sm:$0xff] %v1247_v57  ;;  %v1251_v31 = vmul.f32 %v791_v6, %v559_v8  ;;  %v801_v1 = vld [vmem:[%s1389_s3 + $0x1e0] sm:$0xff]  ;;  %v802_v6 = vld [vmem:[%s1389_s3 + $0x1e8] sm:$0xff]  ;;  %v1278_v20 = vmul.f32 %v797_v40, %v589_v15  ;;  %v1280_v21 = vmul.f32 %v798_v13, %v589_v15 }
  0xc5   : > { %1404 = vst [vmem:[#allocation14_spill] sm:$0xff] %v1249_v27  ;;  %1405 = vst [vmem:[#allocation15_spill] sm:$0xff] %v1253_v34  ;;  %v250_v57 = vld [vmem:[%s1390_s4 + $0x38] sm:$0xff]  ;;  %v593_v40 = vmul.f32 %v799_v61, %v589_v15  ;;  %v248_v61 = vld [vmem:[%s1390_s4 + $0x28] sm:$0xff] }
  0xc6   : > { %1406 = vst [vmem:[#allocation16_spill] sm:$0xff] %v1258_v25  ;;  %1407 = vst [vmem:[#allocation17_spill] sm:$0xff] %v1260_v19 }
  0xc7   : > { %1408 = vst [vmem:[#allocation18_spill] sm:$0xff] %v1280_v21 }
  0xd8   : > { %v838_v55 = vpop.f32.mrf.mxu0  ;;  %v842_v41 = vpop.f32.mrf.mxu1 }
  0xd9   : > { %v345_v47 = vadd.f32 %v838_v55, %v245_v44  ;;  %v361_v32 = vadd.f32 %v842_v41, %v249_v45  ;;  %v246_v44 = vld [vmem:[%s1390_s4 + $0x18] sm:$0xff]  ;;  %v1274_v45 = vmul.f32 %v795_v22, %v559_v8  ;;  %v1276_v55 = vmul.f32 %v796_v35, %v559_v8  ;;  %v803_v22 = vld [vmem:[%s1389_s3 + $0x1f0] sm:$0xff] }
  0xda   : > { %v336_v7 = vpop.f32.mrf.mxu0  ;;  %v352_v27 = vpop.f32.mrf.mxu1  ;;  %v804_v8 = vld [vmem:[%s1389_s3 + $0x1f8] sm:$0xff]  ;;  %v597_v21 = vmul.f32 %v803_v22, %v589_v15 }
  0xdb   : > { %v391_v41 = vadd.f32 %v1001_v29, %v345_v47  ;;  %v395_v19 = vadd.f32 %v1003_v30, %v361_v32  ;;  %v337_v34 = vadd.f32 %v336_v7, %v243_v42  ;;  %v353_v25 = vadd.f32 %v352_v27, %v247_v56  ;;  %v244_v7 = vld [vmem:[%s1390_s4 + $0x8] sm:$0xff] }
  0xdc   : > { %v839_v13 = vpop.f32.mrf.mxu0  ;;  %v843_v35 = vpop.f32.mrf.mxu1  ;;  %v1293_v29 = vmul.f32 %v800_v58, %v589_v15  ;;  %v1295_v30 = vmul.f32 %v801_v1, %v589_v15  ;;  %v1297_v32 = vmul.f32 %v802_v6, %v589_v15 }
  0xdd   : > { %v421_v47 = vadd.f32 %v1037_v43, %v391_v41  ;;  %v425_v27 = vadd.f32 %v1055_v51, %v395_v19  ;;  %v389_v42 = vadd.f32 %v1020_v36, %v337_v34  ;;  %v393_v56 = vadd.f32 %v1022_v37, %v353_v25 }
  0xde   : > { %1409 = vst [vmem:[#allocation19_spill] sm:$0xff] %v1297_v32  ;;  %v348_v58 = vadd.f32 %v839_v13, %v246_v44  ;;  %v364_v1 = vadd.f32 %v843_v35, %v250_v57  ;;  %v339_v6 = vpop.f32.mrf.mxu0  ;;  %v355_v32 = vpop.f32.mrf.mxu1  ;;  %v1309_v43 = vmul.f32 %v804_v8, %v589_v15  ;;  %v1410_v13 = vld [vmem:[#allocation10_spill] sm:$0xff] }
  0xdf   : > { %v419_v51 = vadd.f32 %v1057_v52, %v389_v42  ;;  %v423_v36 = vadd.f32 %v1059_v53, %v393_v56  ;;  %v451_v37 = vadd.f32 %v1092_v3, %v421_v47  ;;  %v455_v25 = vadd.f32 %v1096_v5, %v425_v27  ;;  %v1411_v35 = vld [vmem:[#allocation2_spill] sm:$0xff]  ;;  %v1413_v47 = vld [vmem:[#allocation5_spill] sm:$0xff]  ;;  %v1414_v27 = vld [vmem:[#allocation7_spill] sm:$0xff] }
  0xe0   : > { %v392_v34 = vadd.f32 %v1024_v38, %v348_v58  ;;  %v396_v19 = vadd.f32 %v1026_v39, %v364_v1  ;;  %v340_v41 = vadd.f32 %v339_v6, %v244_v7  ;;  %v356_v44 = vadd.f32 %v355_v32, %v248_v61  ;;  %v1412_v32 = vld [vmem:[#allocation3_spill] sm:$0xff]  ;;  %v1415_v42 = vld [vmem:[#allocation13_spill] sm:$0xff]  ;;  %v1416_v56 = vld [vmem:[#allocation16_spill] sm:$0xff] }
  0xe1   : > { %v449_v57 = vadd.f32 %v1090_v2, %v419_v51  ;;  %v453_v22 = vadd.f32 %v1094_v4, %v423_v36  ;;  %v481_v15 = vadd.f32 %v1124_v16, %v451_v37  ;;  %v485_v52 = vadd.f32 %v1139_v23, %v455_v25  ;;  %v1417_v61 = vld [vmem:[#allocation4_spill] sm:$0xff]  ;;  %v1418_v1 = vld [vmem:[#allocation6_spill] sm:$0xff]  ;;  %v1419_v6 = vld [vmem:[#allocation9_spill] sm:$0xff] }
  0xe2   : > { %v422_v53 = vadd.f32 %v1061_v54, %v392_v34  ;;  %v426_v3 = vadd.f32 %v1075_v59, %v396_v19  ;;  %v390_v5 = vadd.f32 %v1051_v49, %v340_v41  ;;  %v394_v38 = vadd.f32 %v1053_v50, %v356_v44  ;;  %v1420_v51 = vld [vmem:[#allocation12_spill] sm:$0xff]  ;;  %v1422_v41 = vld [vmem:[#allocation11_spill] sm:$0xff] }
  0xe3   : > { %v479_v39 = vadd.f32 %v1111_v11, %v449_v57  ;;  %v483_v8 = vadd.f32 %v1128_v18, %v453_v22  ;;  %v511_v2 = vadd.f32 %v1177_v46, %v481_v15  ;;  %v515_v4 = vadd.f32 %v1194_v60, %v485_v52  ;;  %v1421_v34 = vld [vmem:[#allocation8_spill] sm:$0xff]  ;;  %v1424_v52 = vld [vmem:[#allocation14_spill] sm:$0xff] }
  0xe4   : > { %v452_v16 = vadd.f32 %v1107_v9, %v422_v53  ;;  %v456_v23 = vadd.f32 %v1109_v10, %v426_v3  ;;  %v420_v54 = vadd.f32 %v1080_v62, %v390_v5  ;;  %v424_v59 = vadd.f32 %v1085_v0, %v394_v38  ;;  %v1425_v3 = vld [vmem:[#allocation17_spill] sm:$0xff] }
  0xe5   : > { %v509_v49 = vadd.f32 %v1158_v33, %v479_v39  ;;  %v513_v50 = vadd.f32 %v1181_v48, %v483_v8  ;;  %v541_v11 = vadd.f32 %v1211_v14, %v511_v2  ;;  %v545_v18 = vadd.f32 %v1228_v28, %v515_v4  ;;  %v1426_v4 = vld [vmem:[#allocation18_spill] sm:$0xff] }
  0xe6   : > { %v482_v46 = vadd.f32 %v1126_v17, %v452_v16  ;;  %v486_v60 = vadd.f32 %v1141_v24, %v456_v23  ;;  %v450_v9 = vadd.f32 %v1113_v12, %v420_v54  ;;  %v454_v10 = vadd.f32 %v1145_v26, %v424_v59  ;;  %v1427_v16 = vld [vmem:[#allocation19_spill] sm:$0xff] }
  0xe7   : > { %v539_v62 = vadd.f32 %v1198_v63, %v509_v49  ;;  %v543_v0 = vadd.f32 %v1410_v13, %v513_v50  ;;  %v571_v33 = vadd.f32 %v1251_v31, %v541_v11  ;;  %v575_v48 = vadd.f32 %v1274_v45, %v545_v18 }
  0xe8   : > { %v480_v14 = vadd.f32 %v1411_v35, %v450_v9  ;;  %v484_v28 = vadd.f32 %v1412_v32, %v454_v10  ;;  %v512_v17 = vadd.f32 %v1413_v47, %v482_v46  ;;  %v516_v24 = vadd.f32 %v1414_v27, %v486_v60 }
  0xe9   : > { %v569_v12 = vadd.f32 %v1415_v42, %v539_v62  ;;  %v573_v26 = vadd.f32 %v1416_v56, %v543_v0  ;;  %v601_v7 = vadd.f32 %v593_v40, %v571_v33  ;;  %v605_v63 = vadd.f32 %v597_v21, %v575_v48  ;;  %v1423_v21 = vld [vmem:[#allocation15_spill] sm:$0xff] }
  0xea   : > { %v510_v58 = vadd.f32 %v1417_v61, %v480_v14  ;;  %v514_v31 = vadd.f32 %v1418_v1, %v484_v28  ;;  %v542_v45 = vadd.f32 %v1419_v6, %v512_v17  ;;  %v546_v36 = vadd.f32 %v1420_v51, %v516_v24 }
  0xeb   : > { %v599_v37 = vadd.f32 %v1278_v20, %v569_v12  ;;  %v603_v25 = vadd.f32 %v1295_v30, %v573_v26  ;;  %vm609_vm2 = vcmp.ge.f32.partialorder %v601_v7, 0.0  ;;  %vm613_vm3 = vcmp.ge.f32.partialorder %v605_v63, 0.0 }
  0xec   : > { %v540_v19 = vadd.f32 %v1421_v34, %v510_v58  ;;  %v544_v40 = vadd.f32 %v1422_v41, %v514_v31  ;;  %v572_v44 = vadd.f32 %v1423_v21, %v542_v45  ;;  %v576_v57 = vadd.f32 %v1276_v55, %v546_v36 }
  0xed   : > { %vm607_vm4 = vcmp.ge.f32.partialorder %v599_v37, 0.0  ;;  %vm611_vm5 = vcmp.ge.f32.partialorder %v603_v25, 0.0  ;;  %v615_v22 = vmul.f32 0.2, %v599_v37  ;;  %v617_v15 = vmul.f32 0.2, %v601_v7 }
  0xee   : > { %v570_v53 = vadd.f32 %v1424_v52, %v540_v19  ;;  %v574_v20 = vadd.f32 %v1425_v3, %v544_v40  ;;  %v602_v30 = vadd.f32 %v1293_v29, %v572_v44  ;;  %v606_v5 = vadd.f32 %v1309_v43, %v576_v57 }
  0xef   : > { %v619_v38 = vmul.f32 0.2, %v603_v25  ;;  %v621_v39 = vmul.f32 0.2, %v605_v63  ;;  %v623_v8 = vsel %vm607_vm4, %v599_v37, %v615_v22  ;;  %v625_v2 = vsel %vm609_vm2, %v601_v7, %v617_v15 }
  0xf0   : > { %v600_v55 = vadd.f32 %v1426_v4, %v570_v53  ;;  %v604_v23 = vadd.f32 %v1427_v16, %v574_v20  ;;  %vm610_vm6 = vcmp.ge.f32.partialorder %v602_v30, 0.0  ;;  %vm614_vm7 = vcmp.ge.f32.partialorder %v606_v5, 0.0 }
  0xf1   : > { %v618_v54 = vmul.f32 0.2, %v602_v30  ;;  %v622_v59 = vmul.f32 0.2, %v606_v5  ;;  %v627_v49 = vsel %vm611_vm5, %v603_v25, %v619_v38  ;;  %v629_v50 = vsel %vm613_vm3, %v605_v63, %v621_v39 }
  0xf2   : > { %vm608_vm8 = vcmp.ge.f32.partialorder %v600_v55, 0.0  ;;  %vm612_vm9 = vcmp.ge.f32.partialorder %v604_v23, 0.0  ;;  %v616_v29 = vmul.f32 0.2, %v600_v55  ;;  %v620_v43 = vmul.f32 0.2, %v604_v23 }
  0xf3   : > { %v626_v11 = vsel %vm610_vm6, %v602_v30, %v618_v54  ;;  %v630_v18 = vsel %vm614_vm7, %v606_v5, %v622_v59  ;;  %v815_v46 = vpack.c.bf16 %v623_v8, %v623_v8  ;;  %v817_v60 = vpack.c.bf16 %v625_v2, %v625_v2 }
  0xf4   : > { %v624_v9 = vsel %vm608_vm8, %v600_v55, %v616_v29  ;;  %v628_v10 = vsel %vm612_vm9, %v604_v23, %v620_v43  ;;  %v818_v62 = vpack.c.bf16 %v626_v11, %v626_v11  ;;  %v819_v13 = vpack.c.bf16 %v627_v49, %v627_v49 }
  0xf5   : > { %v816_v0 = vpack.c.bf16 %v624_v9, %v624_v9  ;;  %v820_v33 = vpack.c.bf16 %v628_v10, %v628_v10  ;;  %v821_v48 = vpack.c.bf16 %v629_v50, %v629_v50  ;;  %v822_v35 = vpack.c.bf16 %v630_v18, %v630_v18  ;;  %664 = vst.msk [vmem:[%s226_s20] sm:$0xf] %vm663_vm1, %v815_v46 }
  0xf6   : > { %666 = vst.msk [vmem:[%s226_s20 + $0x8] sm:$0xf] %vm663_vm1, %v817_v60  ;;  %667 = vst.msk [vmem:[%s226_s20 + $0xc] sm:$0xf] %vm663_vm1, %v818_v62 }
  0xf7   : > { %668 = vst.msk [vmem:[%s226_s20 + $0x10] sm:$0xf] %vm663_vm1, %v819_v13  ;;  %665 = vst.msk [vmem:[%s226_s20 + $0x4] sm:$0xf] %vm663_vm1, %v816_v0 }
  0xf8   : > { %669 = vst.msk [vmem:[%s226_s20 + $0x14] sm:$0xf] %vm663_vm1, %v820_v33  ;;  %670 = vst.msk [vmem:[%s226_s20 + $0x18] sm:$0xf] %vm663_vm1, %v821_v48 }
  0xf9   : > { %671 = vst.msk [vmem:[%s226_s20 + $0x1c] sm:$0xf] %vm663_vm1, %v822_v35 }
  0xfa PF: > { %s15_s18 = sadd.s32 1, %s894_s18  }
  0xfb   : > { %p12_p4 = scmp.ge.s32.totalorder %s15_s18, 4  }
  0xfd   :  { %14 = sbr.rel (!%p12_p4) target bundleno = 1 (0x1), region = 78 }

// kernel: dcgan_d_nobn_forward.3
= control target key start
LH: loop header
LB: loop body
LE: loop exit
PB: predicated region body
PF: predicated region fallthrough
CT: control target
= control target key end

     0   :  { %s347_s0 = inlined_call_operand.vmem [shape: bf16[32,128], index: 0, kind: input, shape index: {}]   ;;  %s348_s1 = inlined_call_operand.vmem [shape: bf16[128,16], index: 1, kind: input, shape index: {}]   ;;  %s349_s2 = inlined_call_operand.vmem [shape: f32[32,16], index: 2, kind: input, shape index: {}]   ;;  %s350_s3 = inlined_call_operand.hbm [shape: f32[1,1], index: 3, kind: output, shape index: {}]  }
   0x1   :  { %v245_v0 = vld [vmem:[%s348_s1 + $0x38] sm:$0xff]   ;;  %v246_v1 = vld [vmem:[%s348_s1 + $0x30] sm:$0xff]   ;;  %v247_v2 = vld [vmem:[%s348_s1 + $0x28] sm:$0xff]  }
   0x2   :  { %224 = vmatprep.subr.bf16.mxu0 %v245_v0  ;;  %v248_v3 = vld [vmem:[%s348_s1 + $0x20] sm:$0xff]  }
   0x3   :  { %225 = vmatpush3.bf16.msra.mxu0 %v245_v0  ;;  %v253_v4 = vld [vmem:[%s347_s0] sm:$0xff]  }
   0x4   :  { %226 = vmatprep.subr.bf16.mxu0 %v246_v1  ;;  %240 = vmatprep.mubr.bf16.mxu0 %v253_v4 }
   0x7   :  { %227 = vmatpush3.bf16.msra.mxu0 %v246_v1 }
   0x8   :  { %228 = vmatprep.subr.bf16.mxu0 %v247_v2 }
   0x9   :  { %8 = vsyncpa [#allocation3], 0  ;;  %v249_v5 = vld [vmem:[%s348_s1 + $0x18] sm:$0xff]   ;;  %v250_v6 = vld [vmem:[%s348_s1 + $0x10] sm:$0xff]   ;;  %vm165_vm2 = vcmask 130048   ;;  %vm188_vm5 = vcmask 0  }
   0xa   :  { %v251_v7 = vld [vmem:[%s348_s1 + $0x8] sm:$0xff]   ;;  %v252_v8 = vld [vmem:[%s348_s1] sm:$0xff]   ;;  %v159_v12 = vld [vmem:[%s349_s2 + $0x10] sm:$0xff] }
   0xb   :  { %229 = vmatpush3.bf16.msra.mxu0 %v247_v2  ;;  %v254_v9 = vld [vmem:[%s347_s0 + $0x8] sm:$0xff]   ;;  %v157_v16 = vld [vmem:[%s349_s2] sm:$0xff]  ;;  %v160_v21 = vld [vmem:[%s349_s2 + $0x18] sm:$0xff] }
   0xc   :  { %230 = vmatprep.subr.bf16.mxu0 %v248_v3  ;;  %v158_v27 = vld [vmem:[%s349_s2 + $0x8] sm:$0xff]  ;;  %s277_s2 = smov [#allocation2]  }
   0xd   :  { %s196_s11 = sshll.u32 %s277_s2, 4  ;;  %s197_s11 = int_to_ptr.vmem [resolvable:$true] %s196_s11 }
   0xe   :  { %s255_s12 = scalar_lea.vmem %s197_s11, 16  ;;  %s259_s13 = scalar_lea.vmem %s197_s11, 32 }
   0xf   :  { %231 = vmatpush3.bf16.msra.mxu0 %v248_v3  ;;  %p256_p0 = scmp.ne.s32.totalorder %s197_s11, %s255_s12  ;;  %p260_p1 = scmp.lt.s32.totalorder %s197_s11, %s197_s11 }
  0x10   :  { %232 = vmatprep.subr.bf16.mxu0 %v249_v5  ;;  %p261_p2 = scmp.lt.s32.totalorder %s259_s13, %s255_s12 }
  0x12   :  { %p262_p3 = por %p261_p2, %p260_p1 }
  0x13   :  { %233 = vmatpush3.bf16.msra.mxu0 %v249_v5 }
  0x14   :  { %234 = vmatprep.subr.bf16.mxu0 %v250_v6  ;;  %p263_p4 = pnand %p262_p3, %p256_p0 }
  0x17   :  { %235 = vmatpush3.bf16.msra.mxu0 %v250_v6 }
  0x18   :  { %236 = vmatprep.subr.bf16.mxu0 %v251_v7 }
  0x1b   :  { %237 = vmatpush3.bf16.msra.mxu0 %v251_v7 }
  0x1c   :  { %238 = vmatprep.subr.bf16.mxu0 %v252_v8 }
  0x1f   :  { %239 = vmatpush3.bf16.msra.mxu0 %v252_v8 }
  0x22   :  { %241 = vmatmul.mubr.bf16.vlgmr.msra.gmra.mxu0 %v254_v9 }
  0xe2   :  { %v242_v10 = vpop.f32.mrf.mxu0 }
  0xe3   :  { %vm147_vm0 = vcmp.ge.f32.partialorder %v242_v10, 0.0  ;;  %v151_v11 = vmul.f32 0.2, %v242_v10 }
  0xe4   :  { %v130_v13 = vpop.f32.mrf.mxu0 }
  0xe5   :  { %vm145_vm1 = vcmp.ge.f32.partialorder %v130_v13, 0.0  ;;  %v149_v14 = vmul.f32 0.2, %v130_v13  ;;  %v155_v15 = vsel %vm147_vm0, %v242_v10, %v151_v11 }
  0xe6   :  { %v243_v17 = vpop.f32.mrf.mxu0  ;;  %v163_v18 = vmul.f32 %v159_v12, %v155_v15 }
  0xe7   :  { %vm148_vm3 = vcmp.ge.f32.partialorder %v243_v17, 0.0  ;;  %v152_v19 = vmul.f32 0.2, %v243_v17  ;;  %v153_v20 = vsel %vm145_vm1, %v130_v13, %v149_v14 }
  0xe8   :  { %v133_v22 = vpop.f32.mrf.mxu0  ;;  %v172_v23 = vsel %vm165_vm2, %v163_v18, 0.0  ;;  %v161_v24 = vmul.f32 %v157_v16, %v153_v20 }
  0xe9   :  { %vm146_vm4 = vcmp.ge.f32.partialorder %v133_v22, 0.0  ;;  %v150_v25 = vmul.f32 0.2, %v133_v22  ;;  %173 = vadd.xlane.f32.xlu1 %v172_v23  ;;  %v156_v26 = vsel %vm148_vm3, %v243_v17, %v152_v19 }
  0xea   :  { %v166_v28 = vsel %vm165_vm2, %v161_v24, 0.0  ;;  %v164_v29 = vmul.f32 %v160_v21, %v156_v26 }
  0xeb   :  { %v154_v30 = vsel %vm146_vm4, %v133_v22, %v150_v25  ;;  %167 = vadd.xlane.f32.xlu0 %v166_v28 }
  0xec   :  { %v175_v31 = vsel %vm165_vm2, %v164_v29, 0.0  ;;  %v162_v32 = vmul.f32 %v158_v27, %v154_v30 }
  0xed   :  { %176 = vadd.xlane.f32.xlu1 %v175_v31 }
  0xee   :  { %v169_v33 = vsel %vm165_vm2, %v162_v32, 0.0 }
  0xef   :  { %170 = vadd.xlane.f32.xlu0 %v169_v33 }
 0x172   :  { %v174_v35 = vpop.xlane.xlu1 %173 }
 0x174   :  { %v168_v34 = vpop.xlane.xlu0 %167 }
 0x176   :  { %v177_v39 = vpop.xlane.xlu1 %176 }
 0x178   :  { %v171_v36 = vpop.xlane.xlu0 %170 }
 0x179   :  { %v178_v37 = vadd.f32 %v171_v36, %v168_v34 }
 0x17b   :  { %v179_v38 = vadd.f32 %v178_v37, %v174_v35 }
 0x17d   :  { %v180_v40 = vadd.f32 %v179_v38, %v177_v39 }
 0x17f   :  { %v181_v41 = vrot.slane %v180_v40, 4 }
 0x181   :  { %v182_v42 = vadd.f32 %v181_v41, %v180_v40 }
 0x183   :  { %v183_v43 = vrot.slane %v182_v42, 2 }
 0x185   :  { %v184_v44 = vadd.f32 %v183_v43, %v182_v42 }
 0x187   :  { %v185_v45 = vrot.slane %v184_v44, 1 }
 0x189   :  { %v186_v46 = vadd.f32 %v185_v45, %v184_v44 }
 0x18b   :  { %v187_v47 = vmul.f32 0.5, %v186_v46 }
 0x18d   :  { %189 = vst.msk [vmem:[#allocation2] sm:$0x1] %vm188_vm5, %v187_v47 }
 0x18e   :  { %266 = shalt.err (!%p263_p4)
}
 0x18f   :  { %199 = dma.vmem_to_hbm [thread:$0]  %s197_s11, 16, %s350_s3, [#allocation3]  }
 0x190   :  { %275 = dma.done.wait [#allocation3], 16  }
 0x191   :  { %276 = vsyncadd [#allocation3], 4294967280 }
 0x192   :  { %203 = vsyncpa [#allocation3], 1 }

</bundles_post_ra>
